<compile_context>
chip_gen: v7x
topology: tpu7x:2x2x1
jax: 0.10.0
libtpu: 0.0.40
codegen_flags: <defaults>
</compile_context>

<pallas_src>
import functools

import jax
import jax.numpy as jnp
from jax.experimental import pallas as pl
from jax.experimental.pallas import tpu as pltpu

LN_EPS = 1e-5  # PyTorch nn.LayerNorm default


# --------------------------- hardware / tiling helpers ---------------------------
def _vmem_budget_bytes():
    """~80% of per-core VMEM (generation-aware); conservative fallback."""
    try:
        cap = int(pltpu.get_tpu_info().vmem_capacity_bytes)
    except Exception:
        cap = 64 * 1024 * 1024  # v7x-sized fallback -> safe everywhere
    return max(16 * 1024 * 1024, int(cap * 0.8))


def _round_up(x, m):
    return (x + m - 1) // m * m


def _sublane(dtype):
    it = jnp.dtype(dtype).itemsize
    return 8 if it >= 4 else (16 if it == 2 else 32)


def _pad_rows(x2d, tm):
    n = x2d.shape[0]
    n_pad = _round_up(n, tm)
    if n_pad != n:
        x2d = jnp.pad(x2d, ((0, n_pad - n), (0, 0)))
    return x2d, n_pad


def _pad_cols(a, multiple=128):
    c = a.shape[-1]
    c_pad = _round_up(c, multiple)
    if c_pad != c:
        pad = [(0, 0)] * (a.ndim - 1) + [(0, c_pad - c)]
        a = jnp.pad(a, pad)
    return a, c_pad


def _largest_divisor(total, candidates):
    for c in candidates:
        if c <= total and total % c == 0:
            return c
    return None


def _pick_tk(dim_in):
    if dim_in <= 1024:
        return dim_in
    tk = _largest_divisor(dim_in, (1024, 512, 256, 128))
    # TODO(synk): non-128-divisible dim_in > 1024 falls back to a single full-K step.
    return tk if tk is not None else dim_in


def _pick_tm(n_tok, x_dtype, budget, bytes_fn, tm_req):
    sub = _sublane(x_dtype)
    tm = min(_round_up(tm_req, sub), _round_up(n_tok, sub))
    while tm > sub and bytes_fn(tm) > budget:
        tm = max(sub, _round_up(tm // 2, sub))
    return tm


def _fused_bytes(tm, dim_in, tn, tk, x_it, w_it, o_it, multi_k):
    b = 2 * tm * dim_in * x_it            # double-buffered x strip
    b += tm * dim_in * w_it               # xn scratch (matmul dtype)
    b += 2 * tk * tn * w_it               # double-buffered W tile
    b += 2 * tm * tn * o_it               # double-buffered output tile
    if multi_k:
        b += tm * tn * 4                  # f32 accumulator
    b += 2 * dim_in * 4 + 2 * tn * 4      # gamma / beta / bias (approx)
    return b


def _linear_bytes(tm, dim_in, tn, tk, x_it, w_it, o_it, multi_k):
    b = 2 * tm * dim_in * x_it            # resident (double-buffered) LHS strip
    b += 2 * tk * tn * w_it
    b += 2 * tm * tn * o_it
    if multi_k:
        b += tm * tn * 4
    b += 2 * tn * 4
    return b


# ------------------------------ LN math (in-kernel) ------------------------------
def _ln_f32(x, g, b):
    # Two independent reductions (sum, sum-of-squares) -> overlappable XLU work.
    n = x.shape[-1]
    s1 = jnp.sum(x, axis=-1, keepdims=True)
    s2 = jnp.sum(x * x, axis=-1, keepdims=True)
    mean = s1 * (1.0 / n)
    var = s2 * (1.0 / n) - mean * mean
    inv = jax.lax.rsqrt(var + LN_EPS)
    return (x - mean) * inv * g + b


# ----------------------------- standalone LayerNorm ------------------------------
def _layernorm_kernel(x_ref, g_ref, b_ref, o_ref):
    x = x_ref[...].astype(jnp.float32)
    y = _ln_f32(x, g_ref[...].astype(jnp.float32), b_ref[...].astype(jnp.float32))
    o_ref[...] = y.astype(o_ref.dtype)


def layernorm_pallas(x2d, gamma, beta):
    n_tok, dim = x2d.shape
    budget = _vmem_budget_bytes()
    tm_req = 512 if budget >= (80 << 20) else 256
    x_it = jnp.dtype(x2d.dtype).itemsize
    tm = _pick_tm(n_tok, x2d.dtype, int(budget * 0.9),
                  lambda t: 4 * t * dim * x_it + 2 * dim * 4, tm_req)
    x_p, n_pad = _pad_rows(x2d, tm)
    g2 = gamma.reshape(1, dim)
    b2 = beta.reshape(1, dim)
    out = pl.pallas_call(
        _layernorm_kernel,
        out_shape=jax.ShapeDtypeStruct((n_pad, dim), x2d.dtype),
        grid_spec=pltpu.PrefetchScalarGridSpec(
            num_scalar_prefetch=0,
            grid=(n_pad // tm,),
            in_specs=[
                pl.BlockSpec((tm, dim), lambda i: (i, 0)),
                pl.BlockSpec((1, dim), lambda i: (0, 0)),
                pl.BlockSpec((1, dim), lambda i: (0, 0)),
            ],
            out_specs=pl.BlockSpec((tm, dim), lambda i: (i, 0)),
        ),
        compiler_params=pltpu.CompilerParams(
            dimension_semantics=("parallel",),
            vmem_limit_bytes=budget,
        ),
    )(x_p, g2, b2)
    return out[:n_tok] if n_pad != n_tok else out


# ---------------------- fused LayerNorm + Linear kernels -------------------------
def _prenorm_linear_1k_kernel(x_ref, g_ref, b_ref, w_ref, bias_ref, o_ref, xn_ref):
    j = pl.program_id(1)

    @pl.when(j == 0)  # LN once per row tile; xn persists across output-N tiles
    def _():
        x = x_ref[...].astype(jnp.float32)
        xn_ref[...] = _ln_f32(x, g_ref[...].astype(jnp.float32),
                              b_ref[...].astype(jnp.float32)).astype(xn_ref.dtype)

    out = jnp.dot(xn_ref[...], w_ref[...], preferred_element_type=jnp.float32)
    o_ref[...] = (out + bias_ref[...].astype(jnp.float32)).astype(o_ref.dtype)


def _prenorm_linear_kernel(x_ref, g_ref, b_ref, w_ref, bias_ref, o_ref,
                           xn_ref, acc_ref, *, tk):
    j = pl.program_id(1)
    k = pl.program_id(2)

    @pl.when(jnp.logical_and(j == 0, k == 0))  # LN once per row tile
    def _():
        x = x_ref[...].astype(jnp.float32)
        xn_ref[...] = _ln_f32(x, g_ref[...].astype(jnp.float32),
                              b_ref[...].astype(jnp.float32)).astype(xn_ref.dtype)

    @pl.when(k == 0)
    def _():
        acc_ref[...] = jnp.zeros_like(acc_ref)

    start = pl.multiple_of(k * tk, tk)
    acc_ref[...] += jnp.dot(xn_ref[:, pl.ds(start, tk)], w_ref[...],
                            preferred_element_type=jnp.float32)

    @pl.when(k == pl.num_programs(2) - 1)
    def _():
        o_ref[...] = (acc_ref[...]
                      + bias_ref[...].astype(jnp.float32)).astype(o_ref.dtype)


def prenorm_linear_pallas(x2d, gamma, beta, w, bias, *, out_dtype=None):
    n_tok, dim_in = x2d.shape
    dim_out = w.shape[1]
    out_dtype = out_dtype or x2d.dtype
    budget = _vmem_budget_bytes()

    w_p, dim_out_p = _pad_cols(w, 128)
    bias_p, _ = _pad_cols(bias.reshape(1, dim_out), 128)

    tk = _pick_tk(dim_in)
    multi_k = tk < dim_in
    tn_cands = (512, 256, 128) if budget >= (80 << 20) else (256, 128)
    tn = _largest_divisor(dim_out_p, tn_cands) or dim_out_p

    x_it = jnp.dtype(x2d.dtype).itemsize
    w_it = jnp.dtype(w.dtype).itemsize
    o_it = jnp.dtype(out_dtype).itemsize
    tm_req = 512 if budget >= (80 << 20) else 256
    tm = _pick_tm(n_tok, x2d.dtype, int(budget * 0.9),
                  lambda t: _fused_bytes(t, dim_in, tn, tk, x_it, w_it, o_it, multi_k),
                  tm_req)

    x_p, n_pad = _pad_rows(x2d, tm)
    g2 = gamma.reshape(1, dim_in)
    b2 = beta.reshape(1, dim_in)

    if multi_k:
        grid = (n_pad // tm, dim_out_p // tn, dim_in // tk)
        kernel = functools.partial(_prenorm_linear_kernel, tk=tk)
        in_specs = [
            pl.BlockSpec((tm, dim_in), lambda i, j, k: (i, 0)),   # x (full K, resident)
            pl.BlockSpec((1, dim_in), lambda i, j, k: (0, 0)),    # gamma
            pl.BlockSpec((1, dim_in), lambda i, j, k: (0, 0)),    # beta
            pl.BlockSpec((tk, tn), lambda i, j, k: (k, j)),       # W tile
            pl.BlockSpec((1, tn), lambda i, j, k: (0, j)),        # bias tile
        ]
        out_spec = pl.BlockSpec((tm, tn), lambda i, j, k: (i, j))
        scratch = [pltpu.VMEM((tm, dim_in), w.dtype),             # xn in matmul dtype
                   pltpu.VMEM((tm, tn), jnp.float32)]             # f32 accumulator
        dims = ("parallel", "arbitrary", "arbitrary")
    else:
        grid = (n_pad // tm, dim_out_p // tn)
        kernel = _prenorm_linear_1k_kernel
        in_specs = [
            pl.BlockSpec((tm, dim_in), lambda i, j: (i, 0)),
            pl.BlockSpec((1, dim_in), lambda i, j: (0, 0)),
            pl.BlockSpec((1, dim_in), lambda i, j: (0, 0)),
            pl.BlockSpec((dim_in, tn), lambda i, j: (0, j)),
            pl.BlockSpec((1, tn), lambda i, j: (0, j)),
        ]
        out_spec = pl.BlockSpec((tm, tn), lambda i, j: (i, j))
        scratch = [pltpu.VMEM((tm, dim_in), w.dtype)]
        dims = ("parallel", "arbitrary")

    out = pl.pallas_call(
        kernel,
        out_shape=jax.ShapeDtypeStruct((n_pad, dim_out_p), out_dtype),
        grid_spec=pltpu.PrefetchScalarGridSpec(
            num_scalar_prefetch=0,
            grid=grid,
            in_specs=in_specs,
            out_specs=out_spec,
            scratch_shapes=scratch,
        ),
        compiler_params=pltpu.CompilerParams(
            dimension_semantics=dims,
            vmem_limit_bytes=budget,
        ),
    )(x_p, g2, b2, w_p, bias_p)
    return out[:n_tok, :dim_out]


# ---------------------------- standalone Linear kernels --------------------------
def _linear_1k_kernel(x_ref, w_ref, bias_ref, o_ref):
    out = jnp.dot(x_ref[...].astype(w_ref.dtype), w_ref[...],
                  preferred_element_type=jnp.float32)
    o_ref[...] = (out + bias_ref[...].astype(jnp.float32)).astype(o_ref.dtype)


def _linear_kernel(x_ref, w_ref, bias_ref, o_ref, acc_ref, *, tk):
    k = pl.program_id(2)

    @pl.when(k == 0)
    def _():
        acc_ref[...] = jnp.zeros_like(acc_ref)

    start = pl.multiple_of(k * tk, tk)
    acc_ref[...] += jnp.dot(x_ref[:, pl.ds(start, tk)].astype(w_ref.dtype),
                            w_ref[...], preferred_element_type=jnp.float32)

    @pl.when(k == pl.num_programs(2) - 1)
    def _():
        o_ref[...] = (acc_ref[...]
                      + bias_ref[...].astype(jnp.float32)).astype(o_ref.dtype)


def linear_pallas(x2d, w, bias, *, out_dtype=None):
    n_tok, dim_in = x2d.shape
    dim_out = w.shape[1]
    out_dtype = out_dtype or x2d.dtype
    budget = _vmem_budget_bytes()

    w_p, dim_out_p = _pad_cols(w, 128)
    bias_p, _ = _pad_cols(bias.reshape(1, dim_out), 128)

    tk = _pick_tk(dim_in)
    multi_k = tk < dim_in
    tn_cands = (512, 256, 128) if budget >= (80 << 20) else (256, 128)
    tn = _largest_divisor(dim_out_p, tn_cands) or dim_out_p

    x_it = jnp.dtype(x2d.dtype).itemsize
    w_it = jnp.dtype(w.dtype).itemsize
    o_it = jnp.dtype(out_dtype).itemsize
    tm_req = 512 if budget >= (80 << 20) else 256
    tm = _pick_tm(n_tok, x2d.dtype, int(budget * 0.9),
                  lambda t: _linear_bytes(t, dim_in, tn, tk, x_it, w_it, o_it, multi_k),
                  tm_req)

    x_p, n_pad = _pad_rows(x2d, tm)

    if multi_k:
        grid = (n_pad // tm, dim_out_p // tn, dim_in // tk)
        kernel = functools.partial(_linear_kernel, tk=tk)
        in_specs = [
            pl.BlockSpec((tm, dim_in), lambda i, j, k: (i, 0)),  # resident full-K LHS
            pl.BlockSpec((tk, tn), lambda i, j, k: (k, j)),
            pl.BlockSpec((1, tn), lambda i, j, k: (0, j)),
        ]
        out_spec = pl.BlockSpec((tm, tn), lambda i, j, k: (i, j))
        scratch = [pltpu.VMEM((tm, tn), jnp.float32)]
        dims = ("parallel", "arbitrary", "arbitrary")
    else:
        grid = (n_pad // tm, dim_out_p // tn)
        kernel = _linear_1k_kernel
        in_specs = [
            pl.BlockSpec((tm, dim_in), lambda i, j: (i, 0)),
            pl.BlockSpec((dim_in, tn), lambda i, j: (0, j)),
            pl.BlockSpec((1, tn), lambda i, j: (0, j)),
        ]
        out_spec = pl.BlockSpec((tm, tn), lambda i, j: (i, j))
        scratch = []
        dims = ("parallel", "arbitrary")

    out = pl.pallas_call(
        kernel,
        out_shape=jax.ShapeDtypeStruct((n_pad, dim_out_p), out_dtype),
        grid_spec=pltpu.PrefetchScalarGridSpec(
            num_scalar_prefetch=0,
            grid=grid,
            in_specs=in_specs,
            out_specs=out_spec,
            scratch_shapes=scratch,
        ),
        compiler_params=pltpu.CompilerParams(
            dimension_semantics=dims,
            vmem_limit_bytes=budget,
        ),
    )(x_p, w_p, bias_p)
    return out[:n_tok, :dim_out]


# ------------------------------------ PreNorm ------------------------------------
class PallasLinear:
    """Deterministic Linear(dim_in, dim_out) whose matmul runs in Pallas."""

    def __init__(self, w, b):
        self.w = w
        self.b = b

    def __call__(self, x):
        lead = x.shape[:-1]
        y2d = linear_pallas(x.reshape(-1, x.shape[-1]), self.w, self.b)
        return y2d.reshape(*lead, self.w.shape[1])


class PreNormPallas:
    """y = fn(LayerNorm(x), **kwargs).

    If `fn` is a PallasLinear the LayerNorm is fused into its matmul kernel
    (no HBM round trip for the normalized intermediate); otherwise the
    standalone Pallas LayerNorm runs followed by the arbitrary callable."""

    def __init__(self, dim, fn, gamma, beta):
        self.dim = dim
        self.fn = fn
        self.gamma = gamma
        self.beta = beta

    def __call__(self, x, **kwargs):
        lead = x.shape[:-1]
        x2d = x.reshape(-1, self.dim)
        if isinstance(self.fn, PallasLinear) and not kwargs:
            y2d = prenorm_linear_pallas(x2d, self.gamma, self.beta,
                                        self.fn.w, self.fn.b)
            return y2d.reshape(*lead, self.fn.w.shape[1])
        # TODO(synk): arbitrary `fn` stays a black box; only LN runs in Pallas here.
        xn = layernorm_pallas(x2d, self.gamma, self.beta)
        return self.fn(xn.reshape(*lead, self.dim), **kwargs)


if __name__ == "__main__":
    # dim chosen as a multiple of 128 for lane-dense (unmasked) stores.
    batch, seq, dim = 2, 8, 128
    key = jax.random.PRNGKey(0)
    kx, kg, kb, kw, kbias = jax.random.split(key, 5)

    x = jax.random.normal(kx, (batch, seq, dim), dtype=jnp.float32)

    # Deterministic LayerNorm affine params (nontrivial, to exercise the path).
    gamma = 1.0 + 0.1 * jax.random.normal(kg, (dim,), dtype=jnp.float32)
    beta = 0.1 * jax.random.normal(kb, (dim,), dtype=jnp.float32)

    # Example fn: deterministic Linear(dim, dim) running in Pallas.
    w = jax.random.normal(kw, (dim, dim), dtype=jnp.float32) / jnp.sqrt(dim)
    bias = 0.05 * jax.random.normal(kbias, (dim,), dtype=jnp.float32)

    fn = PallasLinear(w, bias)
    prenorm = PreNormPallas(dim, fn, gamma, beta)

    out = jax.block_until_ready(prenorm(x))                        # fused LN+Linear
    xn_only = jax.block_until_ready(
        layernorm_pallas(x.reshape(-1, dim), gamma, beta))         # LN-only path
    lin_only = jax.block_until_ready(fn(x))                        # standalone linear

    # Pure-JAX reference for sanity.
    mean = jnp.mean(x, axis=-1, keepdims=True)
    var = jnp.mean((x - mean) ** 2, axis=-1, keepdims=True)
    xn_ref = (x - mean) * jax.lax.rsqrt(var + LN_EPS) * gamma + beta
    ref = xn_ref @ w + bias

    assert out.shape == (batch, seq, dim)
    assert jnp.allclose(out, ref, atol=1e-4, rtol=1e-4)
    assert jnp.allclose(xn_only.reshape(batch, seq, dim), xn_ref, atol=1e-5, rtol=1e-5)
    assert jnp.allclose(lin_only, x @ w + bias, atol=1e-4, rtol=1e-4)
    print("KERNEL_OK")
</pallas_src>

<mosaic_0001>
module attributes {stable_mosaic.version = 11 : i64} {
  func.func @_prenorm_linear_1k_kernel(%arg0: i32, %arg1: i32, %arg2: memref<16x128xf32, #tpu.memory_space<vmem>>, %arg3: memref<1x128xf32, #tpu.memory_space<vmem>>, %arg4: memref<1x128xf32, #tpu.memory_space<vmem>>, %arg5: memref<128x128xf32, #tpu.memory_space<vmem>>, %arg6: memref<1x128xf32, #tpu.memory_space<vmem>>, %arg7: memref<16x128xf32, #tpu.memory_space<vmem>>, %arg8: memref<16x128xf32, #tpu.memory_space<vmem>>) attributes {dimension_semantics = [#tpu.dimension_semantics<parallel>, #tpu.dimension_semantics<arbitrary>], iteration_bounds = array<i64: 1, 1>, scalar_prefetch = 0 : i64, scratch_operands = 1 : i64, tpu.core_type = #tpu.core_type<tc>, window_params = [{transform_indices = @transform_0, window_bounds = array<i64: 16, 128>}, {pipeline_mode = #tpu.pipeline_mode<synchronous>, transform_indices = @transform_1, window_bounds = array<i64: 1, 128>}, {pipeline_mode = #tpu.pipeline_mode<synchronous>, transform_indices = @transform_2, window_bounds = array<i64: 1, 128>}, {transform_indices = @transform_3, window_bounds = array<i64: 128, 128>}, {transform_indices = @transform_4, window_bounds = array<i64: 1, 128>}, {transform_indices = @transform_5, window_bounds = array<i64: 16, 128>}]} {
    %c0_i32 = arith.constant 0 : i32
    %0 = arith.cmpi eq, %arg1, %c0_i32 : i32
    %1 = arith.extui %0 : i1 to i32
    %c0_i32_0 = arith.constant 0 : i32
    %2 = arith.cmpi ne, %1, %c0_i32_0 : i32
    scf.if %2 {
      %c0_8 = arith.constant 0 : index
      %c0_9 = arith.constant 0 : index
      %10 = vector.load %arg2[%c0_8, %c0_9] : memref<16x128xf32, #tpu.memory_space<vmem>>, vector<16x128xf32>
      %c0_10 = arith.constant 0 : index
      %c0_11 = arith.constant 0 : index
      %11 = vector.load %arg3[%c0_10, %c0_11] : memref<1x128xf32, #tpu.memory_space<vmem>>, vector<1x128xf32>
      %c0_12 = arith.constant 0 : index
      %c0_13 = arith.constant 0 : index
      %12 = vector.load %arg4[%c0_12, %c0_13] : memref<1x128xf32, #tpu.memory_space<vmem>>, vector<1x128xf32>
      %cst_14 = arith.constant dense<0.000000e+00> : vector<16xf32>
      %13 = vector.multi_reduction <add>, %10, %cst_14 [1] : vector<16x128xf32> to vector<16xf32>
      %14 = vector.shape_cast %13 : vector<16xf32> to vector<16x1xf32>
      %15 = arith.mulf %10, %10 : vector<16x128xf32>
      %cst_15 = arith.constant dense<0.000000e+00> : vector<16xf32>
      %16 = vector.multi_reduction <add>, %15, %cst_15 [1] : vector<16x128xf32> to vector<16xf32>
      %17 = vector.shape_cast %16 : vector<16xf32> to vector<16x1xf32>
      %cst_16 = arith.constant 7.812500e-03 : f32
      %18 = vector.broadcast %cst_16 : f32 to vector<16x1xf32>
      %19 = arith.mulf %14, %18 : vector<16x1xf32>
      %cst_17 = arith.constant 7.812500e-03 : f32
      %20 = vector.broadcast %cst_17 : f32 to vector<16x1xf32>
      %21 = arith.mulf %17, %20 : vector<16x1xf32>
      %22 = arith.mulf %19, %19 : vector<16x1xf32>
      %23 = arith.subf %21, %22 : vector<16x1xf32>
      %cst_18 = arith.constant 9.99999974E-6 : f32
      %24 = vector.broadcast %cst_18 : f32 to vector<16x1xf32>
      %25 = arith.addf %23, %24 : vector<16x1xf32>
      %26 = math.rsqrt %25 : vector<16x1xf32>
      %27 = vector.broadcast %19 : vector<16x1xf32> to vector<16x128xf32>
      %28 = arith.subf %10, %27 : vector<16x128xf32>
      %29 = vector.broadcast %26 : vector<16x1xf32> to vector<16x128xf32>
      %30 = arith.mulf %28, %29 : vector<16x128xf32>
      %31 = vector.broadcast %11 : vector<1x128xf32> to vector<16x128xf32>
      %32 = arith.mulf %30, %31 : vector<16x128xf32>
      %33 = vector.broadcast %12 : vector<1x128xf32> to vector<16x128xf32>
      %34 = arith.addf %32, %33 : vector<16x128xf32>
      %c0_19 = arith.constant 0 : index
      %c0_20 = arith.constant 0 : index
      %35 = vector.load %arg8[%c0_19, %c0_20] : memref<16x128xf32, #tpu.memory_space<vmem>>, vector<16x128xf32>
      tpu.vector_store %arg8[%c0_19, %c0_20], %34 {strides = array<i32>} : memref<16x128xf32, #tpu.memory_space<vmem>>, vector<16x128xf32>,
    } else {
    }
    %c0 = arith.constant 0 : index
    %c0_1 = arith.constant 0 : index
    %3 = vector.load %arg8[%c0, %c0_1] : memref<16x128xf32, #tpu.memory_space<vmem>>, vector<16x128xf32>
    %c0_2 = arith.constant 0 : index
    %c0_3 = arith.constant 0 : index
    %4 = vector.load %arg5[%c0_2, %c0_3] : memref<128x128xf32, #tpu.memory_space<vmem>>, vector<128x128xf32>
    %cst = arith.constant dense<0.000000e+00> : vector<16x128xf32>
    %5 = tpu.matmul %3, %4, %cst {dimension_numbers = #tpu.dot_dimension_numbers<[1], [0], [0], [1], [0, 0, 1, 1], [], []>} : vector<16x128xf32>, vector<128x128xf32>, vector<16x128xf32> -> vector<16x128xf32>
    %c0_4 = arith.constant 0 : index
    %c0_5 = arith.constant 0 : index
    %6 = vector.load %arg6[%c0_4, %c0_5] : memref<1x128xf32, #tpu.memory_space<vmem>>, vector<1x128xf32>
    %7 = vector.broadcast %6 : vector<1x128xf32> to vector<16x128xf32>
    %8 = arith.addf %5, %7 : vector<16x128xf32>
    %c0_6 = arith.constant 0 : index
    %c0_7 = arith.constant 0 : index
    %9 = vector.load %arg7[%c0_6, %c0_7] : memref<16x128xf32, #tpu.memory_space<vmem>>, vector<16x128xf32>
    tpu.vector_store %arg7[%c0_6, %c0_7], %8 {strides = array<i32>} : memref<16x128xf32, #tpu.memory_space<vmem>>, vector<16x128xf32>,
    return
  }
  func.func @transform_0(%arg0: i32, %arg1: i32) -> (i32, i32) {
    %c0_i32 = arith.constant 0 : i32
    %c0_i32_0 = arith.constant 0 : i32
    return %arg0, %c0_i32 : i32, i32
  }
  func.func @transform_1(%arg0: i32, %arg1: i32) -> (i32, i32) {
    %c0_i32 = arith.constant 0 : i32
    %c0_i32_0 = arith.constant 0 : i32
    %c0_i32_1 = arith.constant 0 : i32
    return %c0_i32, %c0_i32_0 : i32, i32
  }
  func.func @transform_2(%arg0: i32, %arg1: i32) -> (i32, i32) {
    %c0_i32 = arith.constant 0 : i32
    %c0_i32_0 = arith.constant 0 : i32
    %c0_i32_1 = arith.constant 0 : i32
    return %c0_i32, %c0_i32_0 : i32, i32
  }
  func.func @transform_3(%arg0: i32, %arg1: i32) -> (i32, i32) {
    %c0_i32 = arith.constant 0 : i32
    %c0_i32_0 = arith.constant 0 : i32
    return %c0_i32, %arg1 : i32, i32
  }
  func.func @transform_4(%arg0: i32, %arg1: i32) -> (i32, i32) {
    %c0_i32 = arith.constant 0 : i32
    %c0_i32_0 = arith.constant 0 : i32
    return %c0_i32, %arg1 : i32, i32
  }
  func.func @transform_5(%arg0: i32, %arg1: i32) -> (i32, i32) {
    %c0_i32 = arith.constant 0 : i32
    return %arg0, %arg1 : i32, i32
  }
}

</mosaic_0001>

<bundles_post_ra>
// kernel: tpu_custom_call.1
= control target key start
LH: loop header
LB: loop body
LE: loop exit
PB: predicated region body
PF: predicated region fallthrough
CT: control target
= control target key end

     0   :  { %10 = vsyncpa [#allocation4], 0  ;;  %s491_s0 = inlined_call_operand.hbm [shape: f32[16,128], index: 0, kind: input, shape index: {}]   ;;  %s492_s1 = inlined_call_operand.vmem [shape: f32[1,128], index: 1, kind: input, shape index: {}]   ;;  %s493_s2 = inlined_call_operand.vmem [shape: f32[1,128], index: 2, kind: input, shape index: {}]   ;;  %s494_s3 = inlined_call_operand.hbm [shape: f32[128,128], index: 3, kind: input, shape index: {}]   ;;  %s495_s4 = inlined_call_operand.vmem [shape: f32[1,128], index: 4, kind: input, shape index: {}]   ;;  %s496_s5 = inlined_call_operand.hbm [shape: f32[16,128], index: 5, kind: output, shape index: {}]  }
   0x1   :  { %11 = vsyncpa [#allocation7], 0 }
   0x2   :  { %12 = vsyncpa [#allocation5], 0  ;;  %s390_s18 = smov [#allocation3]   ;;  %s318_s22 = scalar_lea.hbm %s491_s0, 256 }
   0x3   :  { %s18_s19 = sshll.u32 %s390_s18, 4  ;;  %p319_p0 = scmp.ne.s32.totalorder %s491_s0, %s318_s22  ;;  %s19_s19 = int_to_ptr.vmem [resolvable:$true] %s18_s19 }
   0x4   :  { %p322_p1 = scmp.lt.u32.totalorder %s318_s22, %s491_s0 }
   0x6   :  { %p324_p2 = pnand %p322_p1, %p319_p0 }
   0x8   :  { %327 = shalt.err (!%p324_p2)
}
   0x9   :  { %s328_s27 = scalar_lea.vmem %s19_s19, 256  ;;  %p333_p4 = scmp.lt.s32.totalorder %s19_s19, %s19_s19 }
   0xa   :  { %p329_p3 = scmp.ne.s32.totalorder %s19_s19, %s328_s27  ;;  %p334_p5 = scmp.lt.s32.totalorder %s328_s27, %s328_s27 }
   0xc   :  { %p335_p6 = por %p334_p5, %p333_p4 }
   0xe   :  { %p336_p7 = pnand %p335_p6, %p329_p3 }
  0x10   :  { %339 = shalt.err (!%p336_p7)
}
  0x11   :  { %s391_s28 = smov 128   ;;  %s392_s29 = smov 8  }
  0x12   :  { %24 = dma.hbm_to_vmem [thread:$0]  %s491_s0, 256, %s19_s19, [#allocation4], %s391_s28, %s391_s28, %s392_s29  }
  0x13   :  { %s393_s7 = smov [#allocation6]   ;;  %s340_s11 = scalar_lea.hbm %s494_s3, 2048 }
  0x14   :  { %s34_s8 = sshll.u32 %s393_s7, 4  ;;  %p341_p8 = scmp.ne.s32.totalorder %s494_s3, %s340_s11  ;;  %s35_s8 = int_to_ptr.vmem [resolvable:$true] %s34_s8 }
  0x15   :  { %p344_p9 = scmp.lt.u32.totalorder %s340_s11, %s494_s3 }
  0x17   :  { %p346_p10 = pnand %p344_p9, %p341_p8 }
  0x19   :  { %349 = shalt.err (!%p346_p10)
}
  0x1a   :  { %s350_s16 = scalar_lea.vmem %s35_s8, 2048  ;;  %p355_p12 = scmp.lt.s32.totalorder %s35_s8, %s35_s8 }
  0x1b   :  { %p351_p11 = scmp.ne.s32.totalorder %s35_s8, %s350_s16  ;;  %p356_p13 = scmp.lt.s32.totalorder %s350_s16, %s350_s16 }
  0x1d   :  { %p357_p0 = por %p356_p13, %p355_p12 }
  0x1f   :  { %p358_p1 = pnand %p357_p0, %p351_p11 }
  0x21   :  { %361 = shalt.err (!%p358_p1)
}
  0x22   :  { %40 = dma.hbm_to_vmem [thread:$0]  %s494_s3, 2048, %s35_s8, [#allocation7], %s391_s28, %s391_s28, %s392_s29  }
  0x23   :  { %384 = dma.done.wait [#allocation4], 256  }
  0x24   :  { %385 = vsyncadd [#allocation4], 4294967040 }
  0x25   :  { %386 = dma.done.wait [#allocation7], 2048  }
  0x26   :  { %387 = vsyncadd [#allocation7], 4294965248  ;;  %v455_v0 = vld [vmem:[#allocation3] sm:$0xff]  ;;  %v457_v1 = vld [vmem:[#allocation3 + $0x8] sm:$0xff] }
  0x27   :  { %v103_v2 = vld [vmem:[#allocation6] sm:$0xff]  ;;  %57 = vadd.xlane.f32.xlu0 %v455_v0  ;;  %v61_v3 = vmul.f32 %v455_v0, %v455_v0  ;;  %v104_v4 = vld [vmem:[#allocation6 + $0x8] sm:$0xff]  ;;  %v62_v6 = vmul.f32 %v457_v1, %v457_v1  ;;  %v105_v7 = vld [vmem:[#allocation6 + $0x10] sm:$0xff] }
  0x28   :  { %v277_v5 = vpack.c.bf16 %v104_v4, %v103_v2  ;;  %v106_v8 = vld [vmem:[#allocation6 + $0x18] sm:$0xff]  ;;  %v107_v10 = vld [vmem:[#allocation6 + $0x20] sm:$0xff]  ;;  %v108_v11 = vld [vmem:[#allocation6 + $0x28] sm:$0xff] }
  0x29   :  { %63 = vadd.xlane.f32.xlu1 %v61_v3  ;;  %v281_v9 = vpack.c.bf16 %v106_v8, %v105_v7  ;;  %v285_v12 = vpack.c.bf16 %v108_v11, %v107_v10  ;;  %v109_v13 = vld [vmem:[#allocation6 + $0x30] sm:$0xff]  ;;  %v110_v14 = vld [vmem:[#allocation6 + $0x38] sm:$0xff]  ;;  %v111_v16 = vld [vmem:[#allocation6 + $0x40] sm:$0xff] }
  0x2a   :  { %278 = vmatprep.subr.bf16.mxu0 %v277_v5  ;;  %v289_v15 = vpack.c.bf16 %v110_v14, %v109_v13  ;;  %v112_v17 = vld [vmem:[#allocation6 + $0x48] sm:$0xff]  ;;  %v113_v19 = vld [vmem:[#allocation6 + $0x50] sm:$0xff]  ;;  %v114_v20 = vld [vmem:[#allocation6 + $0x58] sm:$0xff] }
  0x2b   :  { %59 = vadd.xlane.f32.xlu0 %v457_v1  ;;  %280 = vmatpush3.bf16.msra.mxu0 %v277_v5  ;;  %v293_v18 = vpack.c.bf16 %v112_v17, %v111_v16  ;;  %v115_v21 = vld [vmem:[#allocation6 + $0x60] sm:$0xff]  ;;  %v297_v22 = vpack.c.bf16 %v114_v20, %v113_v19  ;;  %v116_v23 = vld [vmem:[#allocation6 + $0x68] sm:$0xff]  ;;  %v117_v25 = vld [vmem:[#allocation6 + $0x70] sm:$0xff] }
  0x2c   :  { %282 = vmatprep.subr.bf16.mxu0 %v281_v9  ;;  %v301_v24 = vpack.c.bf16 %v116_v23, %v115_v21  ;;  %v118_v26 = vld [vmem:[#allocation6 + $0x78] sm:$0xff]  ;;  %v221_v44 = vld [vmem:[%s492_s1] ss:$0 sm:$0xff]  ;;  %s394_s1 = smov [#allocation8]  }
  0x2d   :  { %65 = vadd.xlane.f32.xlu1 %v62_v6  ;;  %v305_v27 = vpack.c.bf16 %v118_v26, %v117_v25  ;;  %v222_v46 = vld [vmem:[%s493_s2] ss:$0 sm:$0xff]  ;;  %s208_s23 = sshll.u32 %s394_s1, 4  ;;  %s209_s23 = int_to_ptr.vmem [resolvable:$true] %s208_s23 }
  0x2e   :  { %v223_v54 = vld [vmem:[%s495_s4] ss:$0 sm:$0xff]  ;;  %s362_s2 = scalar_lea.vmem %s209_s23, 256  ;;  %p367_p3 = scmp.lt.s32.totalorder %s209_s23, %s209_s23 }
  0x2f   :  { %284 = vmatpush3.bf16.msra.mxu0 %v281_v9  ;;  %p363_p2 = scmp.ne.s32.totalorder %s209_s23, %s362_s2  ;;  %p368_p4 = scmp.lt.s32.totalorder %s362_s2, %s362_s2 }
  0x30   :  { %286 = vmatprep.subr.bf16.mxu0 %v285_v12 }
  0x31   :  { %p369_p5 = por %p368_p4, %p367_p3 }
  0x33   :  { %288 = vmatpush3.bf16.msra.mxu0 %v285_v12  ;;  %p370_p6 = pnand %p369_p5, %p363_p2 }
  0x34   :  { %290 = vmatprep.subr.bf16.mxu0 %v289_v15 }
  0x37   :  { %292 = vmatpush3.bf16.msra.mxu0 %v289_v15 }
  0x38   :  { %294 = vmatprep.subr.bf16.mxu0 %v293_v18 }
  0x3b   :  { %296 = vmatpush3.bf16.msra.mxu0 %v293_v18 }
  0x3c   :  { %298 = vmatprep.subr.bf16.mxu0 %v297_v22 }
  0x3f   :  { %300 = vmatpush3.bf16.msra.mxu0 %v297_v22 }
  0x40   :  { %302 = vmatprep.subr.bf16.mxu0 %v301_v24 }
  0x43   :  { %304 = vmatpush3.bf16.msra.mxu0 %v301_v24 }
  0x44   :  { %306 = vmatprep.subr.bf16.mxu0 %v305_v27 }
  0x47   :  { %308 = vmatpush3.bf16.msra.mxu0 %v305_v27 }
  0xb4   :  { %v58_v28 = vpop.xlane.xlu0 %57 }
  0xb5   :  { %v67_v29 = vmul.f32 0.0078125, %v58_v28 }
  0xb6   :  { %v64_v30 = vpop.xlane.xlu1 %63 }
  0xb7   :  { %v71_v31 = vmul.f32 %v67_v29, %v67_v29  ;;  %v69_v32 = vmul.f32 0.0078125, %v64_v30  ;;  %v79_v42 = vsub.f32 %v455_v0, %v67_v29 }
  0xb8   :  { %v60_v33 = vpop.xlane.xlu0 %59 }
  0xb9   :  { %v73_v34 = vsub.f32 %v69_v32, %v71_v31  ;;  %v68_v35 = vmul.f32 0.0078125, %v60_v33 }
  0xba   :  { %v66_v36 = vpop.xlane.xlu1 %65 }
  0xbb   :  { %v75_v37 = vadd.f32 1e-05, %v73_v34  ;;  %v72_v38 = vmul.f32 %v68_v35, %v68_v35  ;;  %v70_v39 = vmul.f32 0.0078125, %v66_v36  ;;  %v80_v47 = vsub.f32 %v457_v1, %v68_v35 }
  0xbd   :  { %314 = vrsqrt.f32 %v75_v37  ;;  %v74_v40 = vsub.f32 %v70_v39, %v72_v38 }
  0xbf   :  { %v76_v41 = vadd.f32 1e-05, %v74_v40 }
  0xc1   :  { %316 = vrsqrt.f32 %v76_v41 }
  0xc7   :  { %v315_v43 = vpop.eup %314 }
  0xc8   :  { %v81_v45 = vmul.f32 %v315_v43, %v79_v42 }
  0xca   :  { %v89_v48 = vmul.f32 %v221_v44, %v81_v45 }
  0xcb   :  { %v317_v49 = vpop.eup %316 }
  0xcc   :  { %v82_v50 = vmul.f32 %v317_v49, %v80_v47  ;;  %v97_v51 = vadd.f32 %v222_v46, %v89_v48 }
  0xce   :  { %v90_v52 = vmul.f32 %v221_v44, %v82_v50  ;;  %274 = vmatprep.mubr.f32.mxu0 %v97_v51 }
  0xd0   :  { %v98_v53 = vadd.f32 %v222_v46, %v90_v52 }
  0xd2   :  { %275 = vmatmul.mubr.f32.vlgmr.msra.gmra.mrb[0].mxu0 %v98_v53 }
 0x1a5   :  { %v276_v55 = vpop.f32.mrb[0].mxu0 }
 0x1a6   :  { %v198_v56 = vadd.f32 %v276_v55, %v223_v54  ;;  %v192_v57 = vpop.f32.mrb[1].mxu0 }
 0x1a7   :  { %v193_v58 = vadd.f32 %v223_v54, %v192_v57 }
 0x1a8   :  { %202 = vst [vmem:[#allocation8 + $0x8] sm:$0xff] %v198_v56 }
 0x1a9   :  { %201 = vst [vmem:[#allocation8] sm:$0xff] %v193_v58 }
 0x1aa   :  { %373 = shalt.err (!%p370_p6)
}
 0x1ab   :  { %s374_s4 = scalar_lea.hbm %s496_s5, 256 }
 0x1ac   :  { %p375_p7 = scmp.ne.s32.totalorder %s496_s5, %s374_s4  ;;  %p378_p8 = scmp.lt.u32.totalorder %s374_s4, %s496_s5 }
 0x1ae   :  { %p380_p9 = pnand %p378_p8, %p375_p7 }
 0x1b0   :  { %383 = shalt.err (!%p380_p9)
}
 0x1b1   :  { %214 = dma.vmem_to_hbm [thread:$0]  %s209_s23, 256, %s496_s5, [#allocation5], %s391_s28, %s391_s28, %s392_s29  }
 0x1b2   :  { %388 = dma.done.wait [#allocation5], 256  }
 0x1b3   :  { %389 = vsyncadd [#allocation5], 4294967040 }
 0x1b4   :  { %218 = vsyncpa [#allocation4], 1 }
 0x1b5   :  { %219 = vsyncpa [#allocation7], 1 }
 0x1b6   :  { %220 = vsyncpa [#allocation5], 1 }

</bundles_post_ra>
